<compile_context>
chip_gen: v7x
topology: tpu7x:2x2x1
jax: 0.10.0
libtpu: 0.0.40
codegen_flags: <defaults>
</compile_context>

<pallas_src>
import functools
import math

import numpy as np

import jax
import jax.numpy as jnp
from jax.experimental import pallas as pl
from jax.experimental.pallas import tpu as pltpu


# Hyper-parameters (mirrors the `args` of the PyTorch module).
INPUT_SIZE = 4                  # L; must satisfy L // 4 == 1 for fc1 to match
CONV_CHANNELS = (8, 16, 32)
KERNEL_SIZE = 3
HIDDEN_DIM = 32
NUM_CLASSES = 5
OUT_PAD = 8                     # narrow lane pad for the logits (>= NUM_CLASSES)


# -----------------------------------------------------------------------------
# Kernel: the whole network is 5 small bf16 matmuls + bias/ReLU/max on
# (TB, <=128) lane-packed slabs. All weight re-layout happens in pack_params().
# -----------------------------------------------------------------------------
def lithology_kernel(x_ref,
                     w1_ref, b1_ref,
                     w2_ref, b2_ref,
                     w3_ref, b3_ref,
                     fw1_ref, fb1_ref,
                     fw2_ref, fb2_ref,
                     out_ref):
    C0, C1, _ = CONV_CHANNELS

    def mm(a, w_ref):
        # bf16 x bf16 -> f32 accumulate on the MXU.
        return jnp.dot(a.astype(jnp.bfloat16), w_ref[...],
                       preferred_element_type=jnp.float32)

    x = x_ref[...]                                          # (TB, L=4) f32

    # conv1: even|odd output positions fused in one Toeplitz matmul; pool as
    # max of the two halves; shared bias + ReLU applied after the max (exact).
    h1 = mm(x, w1_ref)                                      # (TB, 4*C0)
    p1 = jnp.maximum(
        jnp.maximum(h1[:, :2 * C0], h1[:, 2 * C0:4 * C0]) + b1_ref[...], 0.0)

    # conv2 on the pooled length-2 sequence, same fusion.
    h2 = mm(p1, w2_ref)                                     # (TB, 2*C1)
    p2 = jnp.maximum(
        jnp.maximum(h2[:, :C1], h2[:, C1:2 * C1]) + b2_ref[...], 0.0)

    # conv3 on a length-1 sequence: only the center tap is in-bounds.
    h3 = jnp.maximum(mm(p2, w3_ref) + b3_ref[...], 0.0)     # (TB, C2)

    # fc1 -> ReLU -> fc2 (fc2 zero-padded to OUT_PAD output lanes).
    z = jnp.maximum(mm(h3, fw1_ref) + fb1_ref[...], 0.0)    # (TB, H)
    y = mm(z, fw2_ref) + fb2_ref[...]                       # (TB, OUT_PAD)
    out_ref[...] = y.astype(out_ref.dtype)


# -----------------------------------------------------------------------------
# One-time parameter packing (host-side numpy): Toeplitz conv weights with the
# even/odd pool-selection folded in, transposed FC weights, padded fc2.
# Weights -> bf16 (MXU operands), biases stay f32 (VPU adds).
# -----------------------------------------------------------------------------
def _conv_toeplitz(w, lin):
    """w: (Cout, Cin, K) torch layout -> (lin*Cin, lin*Cout) 'same' conv matrix.

    Position-major lane packing: column index = t*Cout + c, row = s*Cin + ci.
    """
    w = np.asarray(w, dtype=np.float32)
    cout, cin, k = w.shape
    pad = (k - 1) // 2
    t_mat = np.zeros((lin * cin, lin * cout), dtype=np.float32)
    for t in range(lin):
        for kk in range(k):
            s = t + kk - pad
            if 0 <= s < lin:
                t_mat[s * cin:(s + 1) * cin,
                      t * cout:(t + 1) * cout] = w[:, :, kk].T
    return t_mat


def pack_params(params):
    (w1, b1, w2, b2, w3, b3, fw1, fb1, fw2, fb2) = params
    C0, C1, C2 = CONV_CHANNELS
    L = INPUT_SIZE

    # conv1 Toeplitz, columns reordered to [even positions | odd positions].
    w1t = _conv_toeplitz(w1, L)                                   # (L, L*C0)
    w1e = np.concatenate([w1t[:, 0 * C0:1 * C0],
                          w1t[:, 2 * C0:3 * C0]], axis=1)         # (L, 2*C0)
    w1o = np.concatenate([w1t[:, 1 * C0:2 * C0],
                          w1t[:, 3 * C0:4 * C0]], axis=1)         # (L, 2*C0)
    w1eo = np.concatenate([w1e, w1o], axis=1)                     # (L, 4*C0)
    b1p = np.tile(np.asarray(b1, np.float32), 2)[None, :]         # (1, 2*C0)

    # conv2 Toeplitz over the pooled length-2 sequence; columns are already
    # [pos0 (even) | pos1 (odd)] in position-major packing.
    w2eo = _conv_toeplitz(w2, L // 2)                             # (2*C0, 2*C1)
    b2p = np.asarray(b2, np.float32)[None, :]                     # (1, C1)

    # conv3 on a length-1 sequence: only the center tap contributes.
    w3c = np.asarray(w3, np.float32)[:, :, KERNEL_SIZE // 2].T    # (C1, C2)
    b3p = np.asarray(b3, np.float32)[None, :]                     # (1, C2)

    fw1k = np.asarray(fw1, np.float32).T                          # (C2, H)
    fb1p = np.asarray(fb1, np.float32)[None, :]                   # (1, H)

    # fc2 padded to OUT_PAD lanes; wrapper slices back to NUM_CLASSES.
    fw2p = np.zeros((HIDDEN_DIM, OUT_PAD), np.float32)
    fw2p[:, :NUM_CLASSES] = np.asarray(fw2, np.float32).T
    fb2p = np.zeros((1, OUT_PAD), np.float32)
    fb2p[0, :NUM_CLASSES] = np.asarray(fb2, np.float32)

    weights = (w1eo, w2eo, w3c, fw1k, fw2p)
    biases = (b1p, b2p, b3p, fb1p, fb2p)
    packed = (
        jnp.asarray(weights[0], jnp.bfloat16), jnp.asarray(biases[0]),
        jnp.asarray(weights[1], jnp.bfloat16), jnp.asarray(biases[1]),
        jnp.asarray(weights[2], jnp.bfloat16), jnp.asarray(biases[2]),
        jnp.asarray(weights[3], jnp.bfloat16), jnp.asarray(biases[3]),
        jnp.asarray(weights[4], jnp.bfloat16), jnp.asarray(biases[4]),
    )
    return packed


# -----------------------------------------------------------------------------
# Forward wrapper
# -----------------------------------------------------------------------------
@functools.partial(jax.jit, static_argnames=("batch_block",))
def lithology_forward(x, packed, *, batch_block=2048):
    B, L = x.shape
    assert L == INPUT_SIZE

    def round8(n):
        return ((n + 7) // 8) * 8

    # Batch tile: multiple of 8 sublanes, at most batch_block rows per step.
    bp_full = round8(B)
    tb = max(8, min(batch_block, bp_full))
    # Keep >= 2 grid steps when possible so v7x's two TensorCores both work.
    if bp_full > 8 and (bp_full + tb - 1) // tb < 2:
        tb = max(8, round8((bp_full // 2 + 7) // 8 * 8))
        tb = max(8, round8(-(-bp_full // 2)))
    Bp = ((B + tb - 1) // tb) * tb
    if Bp != B:
        x = jnp.pad(x, ((0, Bp - B), (0, 0)))

    def wspec(a):
        return pl.BlockSpec(a.shape, lambda i: (0, 0))

    grid = (Bp // tb,)
    out = pl.pallas_call(
        lithology_kernel,
        out_shape=jax.ShapeDtypeStruct((Bp, OUT_PAD), jnp.float32),
        grid=grid,
        in_specs=[pl.BlockSpec((tb, L), lambda i: (i, 0))]
                 + [wspec(a) for a in packed],
        out_specs=pl.BlockSpec((tb, OUT_PAD), lambda i: (i, 0)),
        compiler_params=pltpu.CompilerParams(
            dimension_semantics=("parallel",),
            vmem_limit_bytes=48 * 1024 * 1024),
    )(x, *packed)
    return out[:B, :NUM_CLASSES]


# -----------------------------------------------------------------------------
# Parameter init (torch-default-like) and pure-JAX f32 reference
# -----------------------------------------------------------------------------
def init_params(key):
    C0, C1, C2 = CONV_CHANNELS

    def u(k, shape, fan_in):
        bound = 1.0 / math.sqrt(fan_in)
        return jax.random.uniform(k, shape, jnp.float32, -bound, bound)

    ks = jax.random.split(key, 10)
    w1 = u(ks[0], (C0, 1, KERNEL_SIZE), 1 * KERNEL_SIZE)
    b1 = u(ks[1], (C0,), 1 * KERNEL_SIZE)
    w2 = u(ks[2], (C1, C0, KERNEL_SIZE), C0 * KERNEL_SIZE)
    b2 = u(ks[3], (C1,), C0 * KERNEL_SIZE)
    w3 = u(ks[4], (C2, C1, KERNEL_SIZE), C1 * KERNEL_SIZE)
    b3 = u(ks[5], (C2,), C1 * KERNEL_SIZE)
    fw1 = u(ks[6], (HIDDEN_DIM, C2), C2)
    fb1 = u(ks[7], (HIDDEN_DIM,), C2)
    fw2 = u(ks[8], (NUM_CLASSES, HIDDEN_DIM), HIDDEN_DIM)
    fb2 = u(ks[9], (NUM_CLASSES,), HIDDEN_DIM)
    return (w1, b1, w2, b2, w3, b3, fw1, fb1, fw2, fb2)


def reference_forward(x, params):
    (w1, b1, w2, b2, w3, b3, fw1, fb1, fw2, fb2) = params
    h = x[:, None, :]                     # (B, 1, L) NCL

    def conv_relu(h, w, b):
        y = jax.lax.conv_general_dilated(
            h, w, window_strides=(1,), padding=((1, 1),),
            dimension_numbers=("NCH", "OIH", "NCH"))
        return jax.nn.relu(y + b[None, :, None])

    def maxpool(h):
        B, C, L = h.shape
        return jnp.max(h.reshape(B, C, L // 2, 2), axis=-1)

    h = maxpool(conv_relu(h, w1, b1))
    h = maxpool(conv_relu(h, w2, b2))
    h = conv_relu(h, w3, b3)
    f = h.reshape(h.shape[0], -1)
    z = jax.nn.relu(f @ fw1.T + fb1)
    return z @ fw2.T + fb2


if __name__ == "__main__":
    key = jax.random.PRNGKey(0)
    pkey, xkey = jax.random.split(key)
    params = init_params(pkey)
    packed = pack_params(params)          # one-time weight re-layout (bf16)

    B = 16
    x = jax.random.normal(xkey, (B, INPUT_SIZE), jnp.float32)

    out = lithology_forward(x, packed)
    out = jax.block_until_ready(out)

    ref = reference_forward(x, params)
    assert out.shape == (B, NUM_CLASSES)
    # bf16 GEMM chain: looser tolerance than the f32 path.
    assert jnp.allclose(out, ref, atol=5e-2, rtol=5e-2), (
        float(jnp.max(jnp.abs(out - ref))))
    print("KERNEL_OK")
</pallas_src>

<mosaic_0001>
module attributes {stable_mosaic.version = 11 : i64} {
  func.func @lithology_kernel(%arg0: i32, %arg1: memref<8x4xf32, #tpu.memory_space<vmem>>, %arg2: memref<4x32xbf16, #tpu.memory_space<vmem>>, %arg3: memref<1x16xf32, #tpu.memory_space<vmem>>, %arg4: memref<16x32xbf16, #tpu.memory_space<vmem>>, %arg5: memref<1x16xf32, #tpu.memory_space<vmem>>, %arg6: memref<16x32xbf16, #tpu.memory_space<vmem>>, %arg7: memref<1x32xf32, #tpu.memory_space<vmem>>, %arg8: memref<32x32xbf16, #tpu.memory_space<vmem>>, %arg9: memref<1x32xf32, #tpu.memory_space<vmem>>, %arg10: memref<32x8xbf16, #tpu.memory_space<vmem>>, %arg11: memref<1x8xf32, #tpu.memory_space<vmem>>, %arg12: memref<8x8xf32, #tpu.memory_space<vmem>>) attributes {dimension_semantics = [#tpu.dimension_semantics<parallel>], iteration_bounds = array<i64: 2>, scalar_prefetch = 0 : i64, scratch_operands = 0 : i64, tpu.core_type = #tpu.core_type<tc>, window_params = [{transform_indices = @transform_0, window_bounds = array<i64: 8, 4>}, {pipeline_mode = #tpu.pipeline_mode<synchronous>, transform_indices = @transform_1, window_bounds = array<i64: 4, 32>}, {pipeline_mode = #tpu.pipeline_mode<synchronous>, transform_indices = @transform_2, window_bounds = array<i64: 1, 16>}, {pipeline_mode = #tpu.pipeline_mode<synchronous>, transform_indices = @transform_3, window_bounds = array<i64: 16, 32>}, {pipeline_mode = #tpu.pipeline_mode<synchronous>, transform_indices = @transform_4, window_bounds = array<i64: 1, 16>}, {pipeline_mode = #tpu.pipeline_mode<synchronous>, transform_indices = @transform_5, window_bounds = array<i64: 16, 32>}, {pipeline_mode = #tpu.pipeline_mode<synchronous>, transform_indices = @transform_6, window_bounds = array<i64: 1, 32>}, {pipeline_mode = #tpu.pipeline_mode<synchronous>, transform_indices = @transform_7, window_bounds = array<i64: 32, 32>}, {pipeline_mode = #tpu.pipeline_mode<synchronous>, transform_indices = @transform_8, window_bounds = array<i64: 1, 32>}, {pipeline_mode = #tpu.pipeline_mode<synchronous>, transform_indices = @transform_9, window_bounds = array<i64: 32, 8>}, {pipeline_mode = #tpu.pipeline_mode<synchronous>, transform_indices = @transform_10, window_bounds = array<i64: 1, 8>}, {transform_indices = @transform_11, window_bounds = array<i64: 8, 8>}]} {
    %c0 = arith.constant 0 : index
    %c0_0 = arith.constant 0 : index
    %0 = vector.load %arg1[%c0, %c0_0] : memref<8x4xf32, #tpu.memory_space<vmem>>, vector<8x4xf32>
    %1 = arith.truncf %0 : vector<8x4xf32> to vector<8x4xbf16>
    %c0_1 = arith.constant 0 : index
    %c0_2 = arith.constant 0 : index
    %2 = vector.load %arg2[%c0_1, %c0_2] : memref<4x32xbf16, #tpu.memory_space<vmem>>, vector<4x32xbf16>
    %cst = arith.constant dense<0.000000e+00> : vector<8x32xf32>
    %3 = tpu.matmul %1, %2, %cst {dimension_numbers = #tpu.dot_dimension_numbers<[1], [0], [0], [1], [0, 0, 1, 1], [], []>} : vector<8x4xbf16>, vector<4x32xbf16>, vector<8x32xf32> -> vector<8x32xf32>
    %4 = vector.extract_strided_slice %3 {offsets = [0, 0], sizes = [8, 16], strides = [1, 1]} : vector<8x32xf32> to vector<8x16xf32>
    %5 = vector.extract_strided_slice %3 {offsets = [0, 16], sizes = [8, 16], strides = [1, 1]} : vector<8x32xf32> to vector<8x16xf32>
    %6 = arith.maximumf %4, %5 : vector<8x16xf32>
    %c0_3 = arith.constant 0 : index
    %c0_4 = arith.constant 0 : index
    %7 = vector.load %arg3[%c0_3, %c0_4] : memref<1x16xf32, #tpu.memory_space<vmem>>, vector<1x16xf32>
    %8 = vector.broadcast %7 : vector<1x16xf32> to vector<8x16xf32>
    %9 = arith.addf %6, %8 : vector<8x16xf32>
    %cst_5 = arith.constant 0.000000e+00 : f32
    %10 = vector.broadcast %cst_5 : f32 to vector<8x16xf32>
    %11 = arith.maximumf %9, %10 : vector<8x16xf32>
    %12 = arith.truncf %11 : vector<8x16xf32> to vector<8x16xbf16>
    %c0_6 = arith.constant 0 : index
    %c0_7 = arith.constant 0 : index
    %13 = vector.load %arg4[%c0_6, %c0_7] : memref<16x32xbf16, #tpu.memory_space<vmem>>, vector<16x32xbf16>
    %cst_8 = arith.constant dense<0.000000e+00> : vector<8x32xf32>
    %14 = tpu.matmul %12, %13, %cst_8 {dimension_numbers = #tpu.dot_dimension_numbers<[1], [0], [0], [1], [0, 0, 1, 1], [], []>} : vector<8x16xbf16>, vector<16x32xbf16>, vector<8x32xf32> -> vector<8x32xf32>
    %15 = vector.extract_strided_slice %14 {offsets = [0, 0], sizes = [8, 16], strides = [1, 1]} : vector<8x32xf32> to vector<8x16xf32>
    %16 = vector.extract_strided_slice %14 {offsets = [0, 16], sizes = [8, 16], strides = [1, 1]} : vector<8x32xf32> to vector<8x16xf32>
    %17 = arith.maximumf %15, %16 : vector<8x16xf32>
    %c0_9 = arith.constant 0 : index
    %c0_10 = arith.constant 0 : index
    %18 = vector.load %arg5[%c0_9, %c0_10] : memref<1x16xf32, #tpu.memory_space<vmem>>, vector<1x16xf32>
    %19 = vector.broadcast %18 : vector<1x16xf32> to vector<8x16xf32>
    %20 = arith.addf %17, %19 : vector<8x16xf32>
    %cst_11 = arith.constant 0.000000e+00 : f32
    %21 = vector.broadcast %cst_11 : f32 to vector<8x16xf32>
    %22 = arith.maximumf %20, %21 : vector<8x16xf32>
    %23 = arith.truncf %22 : vector<8x16xf32> to vector<8x16xbf16>
    %c0_12 = arith.constant 0 : index
    %c0_13 = arith.constant 0 : index
    %24 = vector.load %arg6[%c0_12, %c0_13] : memref<16x32xbf16, #tpu.memory_space<vmem>>, vector<16x32xbf16>
    %cst_14 = arith.constant dense<0.000000e+00> : vector<8x32xf32>
    %25 = tpu.matmul %23, %24, %cst_14 {dimension_numbers = #tpu.dot_dimension_numbers<[1], [0], [0], [1], [0, 0, 1, 1], [], []>} : vector<8x16xbf16>, vector<16x32xbf16>, vector<8x32xf32> -> vector<8x32xf32>
    %c0_15 = arith.constant 0 : index
    %c0_16 = arith.constant 0 : index
    %26 = vector.load %arg7[%c0_15, %c0_16] : memref<1x32xf32, #tpu.memory_space<vmem>>, vector<1x32xf32>
    %27 = vector.broadcast %26 : vector<1x32xf32> to vector<8x32xf32>
    %28 = arith.addf %25, %27 : vector<8x32xf32>
    %cst_17 = arith.constant 0.000000e+00 : f32
    %29 = vector.broadcast %cst_17 : f32 to vector<8x32xf32>
    %30 = arith.maximumf %28, %29 : vector<8x32xf32>
    %31 = arith.truncf %30 : vector<8x32xf32> to vector<8x32xbf16>
    %c0_18 = arith.constant 0 : index
    %c0_19 = arith.constant 0 : index
    %32 = vector.load %arg8[%c0_18, %c0_19] : memref<32x32xbf16, #tpu.memory_space<vmem>>, vector<32x32xbf16>
    %cst_20 = arith.constant dense<0.000000e+00> : vector<8x32xf32>
    %33 = tpu.matmul %31, %32, %cst_20 {dimension_numbers = #tpu.dot_dimension_numbers<[1], [0], [0], [1], [0, 0, 1, 1], [], []>} : vector<8x32xbf16>, vector<32x32xbf16>, vector<8x32xf32> -> vector<8x32xf32>
    %c0_21 = arith.constant 0 : index
    %c0_22 = arith.constant 0 : index
    %34 = vector.load %arg9[%c0_21, %c0_22] : memref<1x32xf32, #tpu.memory_space<vmem>>, vector<1x32xf32>
    %35 = vector.broadcast %34 : vector<1x32xf32> to vector<8x32xf32>
    %36 = arith.addf %33, %35 : vector<8x32xf32>
    %cst_23 = arith.constant 0.000000e+00 : f32
    %37 = vector.broadcast %cst_23 : f32 to vector<8x32xf32>
    %38 = arith.maximumf %36, %37 : vector<8x32xf32>
    %39 = arith.truncf %38 : vector<8x32xf32> to vector<8x32xbf16>
    %c0_24 = arith.constant 0 : index
    %c0_25 = arith.constant 0 : index
    %40 = vector.load %arg10[%c0_24, %c0_25] : memref<32x8xbf16, #tpu.memory_space<vmem>>, vector<32x8xbf16>
    %cst_26 = arith.constant dense<0.000000e+00> : vector<8x8xf32>
    %41 = tpu.matmul %39, %40, %cst_26 {dimension_numbers = #tpu.dot_dimension_numbers<[1], [0], [0], [1], [0, 0, 1, 1], [], []>} : vector<8x32xbf16>, vector<32x8xbf16>, vector<8x8xf32> -> vector<8x8xf32>
    %c0_27 = arith.constant 0 : index
    %c0_28 = arith.constant 0 : index
    %42 = vector.load %arg11[%c0_27, %c0_28] : memref<1x8xf32, #tpu.memory_space<vmem>>, vector<1x8xf32>
    %43 = vector.broadcast %42 : vector<1x8xf32> to vector<8x8xf32>
    %44 = arith.addf %41, %43 : vector<8x8xf32>
    %c0_29 = arith.constant 0 : index
    %c0_30 = arith.constant 0 : index
    %45 = vector.load %arg12[%c0_29, %c0_30] : memref<8x8xf32, #tpu.memory_space<vmem>>, vector<8x8xf32>
    tpu.vector_store %arg12[%c0_29, %c0_30], %44 {strides = array<i32>} : memref<8x8xf32, #tpu.memory_space<vmem>>, vector<8x8xf32>,
    return
  }
  func.func @transform_0(%arg0: i32) -> (i32, i32) {
    %c0_i32 = arith.constant 0 : i32
    %c0_i32_0 = arith.constant 0 : i32
    return %arg0, %c0_i32 : i32, i32
  }
  func.func @transform_1(%arg0: i32) -> (i32, i32) {
    %c0_i32 = arith.constant 0 : i32
    %c0_i32_0 = arith.constant 0 : i32
    %c0_i32_1 = arith.constant 0 : i32
    return %c0_i32, %c0_i32_0 : i32, i32
  }
  func.func @transform_2(%arg0: i32) -> (i32, i32) {
    %c0_i32 = arith.constant 0 : i32
    %c0_i32_0 = arith.constant 0 : i32
    %c0_i32_1 = arith.constant 0 : i32
    return %c0_i32, %c0_i32_0 : i32, i32
  }
  func.func @transform_3(%arg0: i32) -> (i32, i32) {
    %c0_i32 = arith.constant 0 : i32
    %c0_i32_0 = arith.constant 0 : i32
    %c0_i32_1 = arith.constant 0 : i32
    return %c0_i32, %c0_i32_0 : i32, i32
  }
  func.func @transform_4(%arg0: i32) -> (i32, i32) {
    %c0_i32 = arith.constant 0 : i32
    %c0_i32_0 = arith.constant 0 : i32
    %c0_i32_1 = arith.constant 0 : i32
    return %c0_i32, %c0_i32_0 : i32, i32
  }
  func.func @transform_5(%arg0: i32) -> (i32, i32) {
    %c0_i32 = arith.constant 0 : i32
    %c0_i32_0 = arith.constant 0 : i32
    %c0_i32_1 = arith.constant 0 : i32
    return %c0_i32, %c0_i32_0 : i32, i32
  }
  func.func @transform_6(%arg0: i32) -> (i32, i32) {
    %c0_i32 = arith.constant 0 : i32
    %c0_i32_0 = arith.constant 0 : i32
    %c0_i32_1 = arith.constant 0 : i32
    return %c0_i32, %c0_i32_0 : i32, i32
  }
  func.func @transform_7(%arg0: i32) -> (i32, i32) {
    %c0_i32 = arith.constant 0 : i32
    %c0_i32_0 = arith.constant 0 : i32
    %c0_i32_1 = arith.constant 0 : i32
    return %c0_i32, %c0_i32_0 : i32, i32
  }
  func.func @transform_8(%arg0: i32) -> (i32, i32) {
    %c0_i32 = arith.constant 0 : i32
    %c0_i32_0 = arith.constant 0 : i32
    %c0_i32_1 = arith.constant 0 : i32
    return %c0_i32, %c0_i32_0 : i32, i32
  }
  func.func @transform_9(%arg0: i32) -> (i32, i32) {
    %c0_i32 = arith.constant 0 : i32
    %c0_i32_0 = arith.constant 0 : i32
    %c0_i32_1 = arith.constant 0 : i32
    return %c0_i32, %c0_i32_0 : i32, i32
  }
  func.func @transform_10(%arg0: i32) -> (i32, i32) {
    %c0_i32 = arith.constant 0 : i32
    %c0_i32_0 = arith.constant 0 : i32
    %c0_i32_1 = arith.constant 0 : i32
    return %c0_i32, %c0_i32_0 : i32, i32
  }
  func.func @transform_11(%arg0: i32) -> (i32, i32) {
    %c0_i32 = arith.constant 0 : i32
    %c0_i32_0 = arith.constant 0 : i32
    return %arg0, %c0_i32 : i32, i32
  }
}

</mosaic_0001>

<bundles_post_ra>
// kernel: lithology_forward.1
= control target key start
LH: loop header
LB: loop body
LE: loop exit
PB: predicated region body
PF: predicated region fallthrough
CT: control target
= control target key end

     0   :  { %s925_s17 = smov 0   ;;  %s992_s0 = inlined_call_operand.vmem [shape: f32[16,4], index: 0, kind: input, shape index: {}]   ;;  %s993_s1 = inlined_call_operand.vmem [shape: bf16[4,32], index: 1, kind: input, shape index: {}]   ;;  %s994_s2 = inlined_call_operand.vmem [shape: f32[1,16], index: 2, kind: input, shape index: {}]   ;;  %s995_s3 = inlined_call_operand.vmem [shape: bf16[16,32], index: 3, kind: input, shape index: {}]   ;;  %s996_s4 = inlined_call_operand.vmem [shape: f32[1,16], index: 4, kind: input, shape index: {}]   ;;  %s997_s5 = inlined_call_operand.vmem [shape: bf16[16,32], index: 5, kind: input, shape index: {}]   ;;  %s998_s6 = inlined_call_operand.vmem [shape: f32[1,32], index: 6, kind: input, shape index: {}]   ;;  %s999_s7 = inlined_call_operand.vmem [shape: bf16[32,32], index: 7, kind: input, shape index: {}]   ;;  %s1000_s8 = inlined_call_operand.vmem [shape: f32[1,32], index: 8, kind: input, shape index: {}]   ;;  %s1001_s9 = inlined_call_operand.vmem [shape: bf16[32,8], index: 9, kind: input, shape index: {}]   ;;  %s1002_s10 = inlined_call_operand.vmem [shape: f32[1,8], index: 10, kind: input, shape index: {}]   ;;  %s1003_s11 = inlined_call_operand.vmem [shape: f32[16,8], index: 11, kind: output, shape index: {}]  }
   0x1 LB: > { %s766_s18 = sadd.s32 4294967295, %s860_s17   ;;  %p770_p0 = scmp.ge.s32.totalorder %s860_s17, 1  ;;  %s860_s17 = sphi %s925_s17, %s21_s17  }
   0x2   : > { %p336_p1 = scmp.lt.s32.totalorder %s860_s17, 3 }
   0x4   : > { %p337_p2 = pnand %p770_p0, %p336_p1 }
   0x5   : > { %v385_v0 = vld [vmem:[%s993_s1] sm:$0x3] (!%p337_p2)  ;;  %vm390_vm0 = vcmask (!%p337_p2), 1041408   ;;  %p374_p3 = scmp.lt.s32.totalorder (!%p337_p2), %s766_s18, 1  ;;  %v862_v1 = vmov (!%p337_p2), 0.0   ;;  %vm863_vm1 = vmmov (!%p337_p2), 0  }
   0x6   : > { %340 = sbr.rel (%p337_p2) target bundleno = 1340 (0x53c), region = 64  ;;  %803 = vmatprep.subr.bf16.mxu0 (!%p337_p2), %v862_v1  ;;  %v392_v2 = vsel (!%p337_p2), %vm390_vm0, %v385_v0, 0  ;;  %805 = vmatprep.mubr.msk.bf16.mxu0 (!%p337_p2), %vm863_vm1, %v862_v1  ;;  %vm386_vm2 = vcmask (!%p337_p2), 31744   ;;  %v848_v5 = vld [vmem:[%s995_s3] sm:$0xff] (!%p337_p2)   ;;  %s864_s27 = smov (!%p337_p2), 112   ;;  %vm457_vm3 = vcmask (!%p337_p2), 130048  }
   0x7   : > { %804 = vmatpush3.bf16.msra.mxu0 (!%p337_p2), %v392_v2  ;;  %809 = vmatprep.subr.bf16.mxu1 (!%p337_p2), %v862_v1  ;;  %v774_v10 = vld [vmem:[%s994_s2] ss:$0 sm:$0xff] (!%p337_p2)  ;;  %v851_v28 = vld [vmem:[%s999_s7 + $0x8] sm:$0xff] (!%p337_p2)   ;;  %vm599_vm4 = vcmask (!%p337_p2), 261120   ;;  %vm711_vm5 = vcmask (!%p337_p2), 64512  }
   0x8   : > { %811 = vmatprep.mubr.msk.bf16.mxu1 (!%p337_p2), %vm863_vm1, %v862_v1  ;;  %815 = vmatprep.subr.bf16.mxu0 (!%p337_p2), %v862_v1  ;;  %v849_v16 = vld [vmem:[%s997_s5] sm:$0xff] (!%p337_p2)   ;;  %v853_v38 = vld [vmem:[%s1001_s9 + $0x8] sm:$0xff] (!%p337_p2)  }
   0x9   : > { %810 = vmatpush3.bf16.msra.mxu1 (!%p337_p2), %v848_v5  ;;  %v850_v17 = vld [vmem:[%s999_s7] sm:$0xff] (!%p337_p2)  }
   0xa   : > { %821 = vmatprep.subr.bf16.mxu1 (!%p337_p2), %v862_v1  ;;  %v777_v22 = vld [vmem:[%s996_s4] ss:$0 sm:$0xff] (!%p337_p2) }
   0xb   : > { %v852_v29 = vld [vmem:[%s1001_s9] sm:$0xff] (!%p337_p2)  }
   0xc   : > { %v778_v30 = vld [vmem:[%s998_s6] ss:$0 sm:$0xff] (!%p337_p2) }
   0xd   : > { %s1005_s18 = smov (!%p374_p3, %s766_s18), 1  ;;  %v781_v39 = vld [vmem:[%s1000_s8] ss:$0 sm:$0xff] }
   0xe   : > { %s771_s21 = sshll.u32 %s1005_s18, 3  ;;  %v785_v47 = vld [vmem:[%s1002_s10] ss:$0 sm:$0xff] }
   0xf   : > { %s377_s24 = scalar_lea.vmem %s992_s0, %s771_s21  ;;  %s381_s15 = scalar_lea.vmem %s1003_s11, %s771_s21 }
  0x10   : > { %v383_v3 = vld [vmem:[%s377_s24] sm:$0xff] }
  0x11   : > { %v384_v4 = vpack.c.bf16 %v383_v3, %v383_v3 }
  0x13   : > { %806 = vmatmul.mubr.msk.bf16.vlgmr.msra.gmra.mrb[0].mxu0 %vm386_vm2, %v384_v4 }
  0x14   : > { %817 = vmatprep.mubr.msk.bf16.mxu0 %vm863_vm1, %v862_v1  ;;  %816 = vmatpush3.bf16.msra.mxu0 %v849_v16 }
  0x15   : > { %829 = vmatprep.subr.bf16.mxu0 %v862_v1 }
  0xe6   : > { %v428_v6 = vpop.f32.mrb[0].mxu0 }
  0xe7   : > { %435 = vrot.lane.b32.xlu0 %v428_v6, %s864_s27  ;;  %v807_v7 = vpop.f32.mrb[1].mxu0 }
  0xe8   : > { %v431_v8 = vpop.f32.mrb[2].mxu0 }
  0xe9   : > { %v808_v9 = vpop.f32.mrb[3].mxu0 }
 0x159   : > { %v436_v11 = vpop.permute.xlu0 %435 }
 0x15a   : > { %v438_v12 = vmax.f32 %v428_v6, %v436_v11 }
 0x15c   : > { %v446_v13 = vadd.f32 %v774_v10, %v438_v12 }
 0x15e   : > { %v447_v14 = vmax.f32 %v446_v13, 0.0 }
 0x160   : > { %v448_v15 = vpack.c.bf16 %v447_v14, %v447_v14 }
 0x162   : > { %812 = vmatmul.mubr.msk.bf16.vlgmr.msra.gmra.mrb[0].mxu1 %vm457_vm3, %v448_v15 }
 0x163   : > { %825 = vmatprep.mubr.msk.bf16.mxu1 %vm863_vm1, %v862_v1  ;;  %822 = vmatpush3.bf16.msra.mxu1 %v850_v17 }
 0x164   : > { %823 = vmatprep.subr.bf16.mxu1 %v862_v1 }
 0x167   : > { %824 = vmatpush3.bf16.msra.mxu1 %v851_v28 }
 0x235   : > { %v495_v18 = vpop.f32.mrb[0].mxu1 }
 0x236   : > { %502 = vrot.lane.b32.xlu0 %v495_v18, %s864_s27  ;;  %v813_v19 = vpop.f32.mrb[1].mxu1 }
 0x237   : > { %v498_v20 = vpop.f32.mrb[2].mxu1 }
 0x238   : > { %v814_v21 = vpop.f32.mrb[3].mxu1 }
 0x2a8   : > { %v503_v23 = vpop.permute.xlu0 %502 }
 0x2a9   : > { %v505_v24 = vmax.f32 %v495_v18, %v503_v23 }
 0x2ab   : > { %v513_v25 = vadd.f32 %v777_v22, %v505_v24 }
 0x2ad   : > { %v514_v26 = vmax.f32 %v513_v25, 0.0 }
 0x2af   : > { %v515_v27 = vpack.c.bf16 %v514_v26, %v514_v26 }
 0x2b1   : > { %818 = vmatmul.mubr.msk.bf16.vlgmr.msra.gmra.mrb[4].mxu0 %vm457_vm3, %v515_v27 }
 0x2b2   : > { %833 = vmatprep.mubr.msk.bf16.mxu0 %vm863_vm1, %v862_v1  ;;  %830 = vmatpush3.bf16.msra.mxu0 %v852_v29 }
 0x2b3   : > { %831 = vmatprep.subr.bf16.mxu0 %v862_v1 }
 0x2b6   : > { %832 = vmatpush3.bf16.msra.mxu0 %v853_v38 }
 0x384   : > { %v568_v31 = vpop.f32.mrb[4].mxu0 }
 0x385   : > { %v569_v32 = vadd.f32 %v778_v30, %v568_v31  ;;  %v819_v33 = vpop.f32.mrb[5].mxu0 }
 0x386   : > { %v571_v34 = vpop.f32.mrb[6].mxu0 }
 0x387   : > { %v574_v35 = vmax.f32 %v569_v32, 0.0  ;;  %v820_v36 = vpop.f32.mrb[7].mxu0 }
 0x389   : > { %v575_v37 = vpack.c.bf16 %v574_v35, %v574_v35 }
 0x38b   : > { %826 = vmatmul.mubr.msk.bf16.vlgmr.msra.gmra.mrb[4].mxu1 %vm599_vm4, %v575_v37 }
 0x45e   : > { %v637_v40 = vpop.f32.mrb[4].mxu1 }
 0x45f   : > { %v638_v41 = vadd.f32 %v781_v39, %v637_v40  ;;  %v827_v42 = vpop.f32.mrb[5].mxu1 }
 0x460   : > { %v640_v43 = vpop.f32.mrb[6].mxu1 }
 0x461   : > { %v643_v44 = vmax.f32 %v638_v41, 0.0  ;;  %v828_v45 = vpop.f32.mrb[7].mxu1 }
 0x463   : > { %v644_v46 = vpack.c.bf16 %v643_v44, %v643_v44 }
 0x465   : > { %834 = vmatmul.mubr.msk.bf16.vlgmr.msra.gmra.mrb[8].mxu0 %vm599_vm4, %v644_v46 }
 0x538   : > { %v705_v48 = vpop.f32.mrb[8].mxu0 }
 0x539   : > { %v706_v49 = vadd.f32 %v785_v47, %v705_v48  ;;  %v835_v50 = vpop.f32.mrb[9].mxu0 }
 0x53a   : > { %v708_v51 = vpop.f32.mrb[10].mxu0 }
 0x53b   : > { %712 = vst.msk [vmem:[%s381_s15] sm:$0xff] %vm711_vm5, %v706_v49  ;;  %v836_v52 = vpop.f32.mrb[11].mxu0 }
 0x53c PF: > { %s21_s17 = sadd.s32 1, %s860_s17  }
 0x53d   : > { %p18_p4 = scmp.ge.s32.totalorder %s21_s17, 4  }
 0x53f   :  { %20 = sbr.rel (!%p18_p4) target bundleno = 1 (0x1), region = 94 }

</bundles_post_ra>
